<compile_context>
chip_gen: v7x
topology: tpu7x:2x2x1
jax: 0.10.0
libtpu: 0.0.40
codegen_flags: <defaults>
</compile_context>

<pallas_src>
import functools
import math

import jax
import jax.numpy as jnp
from jax import lax
from jax.experimental import pallas as pl
from jax.experimental.pallas import tpu as pltpu


_SMALL_TABLE_MAX_BYTES = 2 * 1024 * 1024   # table resident in VMEM below this
_SMALL_TABLE_MAX_VOCAB = 1024              # bounds one-hot matmul cost


def _sublane_pack(dtype) -> int:
    """Minimum second-minor-dim multiple for a packed (sublane, 128) tile."""
    return {4: 8, 2: 16, 1: 32}.get(jnp.dtype(dtype).itemsize, 8)


def _round_up(x, m):
    return ((x + m - 1) // m) * m


# --------------------------------------------------------------------------
# Path A: small table, VMEM-resident, one-hot matmul gather on the MXU.
# --------------------------------------------------------------------------
def _embed_small_table_kernel(ids_ref, table_ref, out_ref, *, scale):
    # ids_ref: (1, TB, 1) int32   table_ref: (V, D)   out_ref: (TB, D)
    ids_col = ids_ref[0]                                        # (TB, 1)
    tb = ids_col.shape[0]
    vocab = table_ref.shape[0]
    iota = lax.broadcasted_iota(jnp.int32, (tb, vocab), 1)      # (TB, V)
    onehot = (ids_col == iota).astype(table_ref.dtype)          # (TB, V)
    acc = jnp.dot(onehot, table_ref[...],
                  preferred_element_type=jnp.float32)           # (TB, D) f32
    out_ref[...] = (acc * scale).astype(out_ref.dtype)


def _forward_small_table(flat_ids, table, scale, pack):
    vocab, d = table.shape
    itemsize = jnp.dtype(table.dtype).itemsize
    n = flat_ids.shape[0]

    tb = _round_up(min(max(n, pack), 256), pack)
    n_blocks = -(-n // tb)
    n_padded = n_blocks * tb
    if n_padded != n:
        flat_ids = jnp.concatenate(
            [flat_ids, jnp.zeros((n_padded - n,), jnp.int32)])
    # ids shaped (n_blocks, TB, 1): ids land on sublanes, so the one-hot
    # comparison needs no in-kernel lane->sublane transpose.
    ids3 = flat_ids.reshape(n_blocks, tb, 1)

    kernel = functools.partial(_embed_small_table_kernel, scale=scale)
    return pl.pallas_call(
        kernel,
        out_shape=jax.ShapeDtypeStruct((n_padded, d), table.dtype),
        grid=(n_blocks,),
        in_specs=[
            pl.BlockSpec((1, tb, 1), lambda i: (i, 0, 0)),
            pl.BlockSpec((vocab, d), lambda i: (0, 0)),   # table resident
        ],
        out_specs=pl.BlockSpec((tb, d), lambda i: (i, 0)),
        compiler_params=pltpu.CompilerParams(
            dimension_semantics=("parallel",)),
        cost_estimate=pl.CostEstimate(
            flops=2 * n_padded * vocab * d + n_padded * d,
            transcendentals=0,
            bytes_accessed=vocab * d * itemsize
                           + n_padded * d * itemsize + 4 * n_padded),
    )(ids3, table)


# --------------------------------------------------------------------------
# Path B: large table in HBM, manual row-DMA gather, double-buffered.
# --------------------------------------------------------------------------
def _embed_hbm_gather_kernel(ids_ref, table_ref, out_ref, gbuf, sem, *,
                             tokens_per_block, sub_block, scale):
    tb, sb = tokens_per_block, sub_block
    n_sub = tb // sb
    base = pl.program_id(0) * tb

    def issue(sub_idx, slot):
        # Start `sb` row-gather DMAs into gbuf[slot]; all signal sem[slot].
        def body(t, carry):
            row = ids_ref[base + sub_idx * sb + t]
            pltpu.make_async_copy(table_ref.at[row], gbuf.at[slot, t],
                                  sem.at[slot]).start()
            return carry
        lax.fori_loop(0, sb, body, 0, unroll=8)

    def wait(slot):
        # DMA semaphores count bytes: a single wait whose descriptor covers
        # the full (sb, d) slot accounts for all `sb` row copies of the slot.
        pltpu.make_async_copy(gbuf.at[slot], gbuf.at[slot],
                              sem.at[slot]).wait()

    issue(0, 0)

    def step(sub_idx, carry):
        slot = lax.rem(sub_idx, 2)
        # Prefetch the next sub-block *before* waiting: keeps the HBM gather
        # stream busy and keeps SMEM id reads ahead of the semaphore wait.
        @pl.when(sub_idx + 1 < n_sub)
        def _():
            issue(sub_idx + 1, 1 - slot)
        wait(slot)
        rows = gbuf[slot] * scale                       # scale in table dtype
        start = pl.multiple_of(sub_idx * sb, sb)
        out_ref[pl.ds(start, sb), :] = rows.astype(out_ref.dtype)
        return carry

    lax.fori_loop(0, n_sub, step, 0)


def _forward_hbm_gather(flat_ids, table, scale, pack, tokens_per_block):
    vocab, d = table.shape
    itemsize = jnp.dtype(table.dtype).itemsize
    n = flat_ids.shape[0]

    # Large token block to amortize the ~0.35us grid-step overhead and keep
    # many row DMAs in flight, budgeted so that the double-buffered output
    # block stays small enough for every generation's scoped VMEM default.
    if tokens_per_block is None:
        tb = 512
        budget = 12 * 1024 * 1024
        while tb > 64 and 2 * tb * d * itemsize > budget:
            tb //= 2
    else:
        tb = tokens_per_block
    tb = max(_round_up(tb, pack), pack)
    sb = 64 if tb % 64 == 0 else pack     # sub-block; always divides tb

    n_blocks = -(-n // tb)
    n_padded = n_blocks * tb
    if n_padded != n:
        # Pad with row 0 (always valid); padded rows are sliced off later.
        flat_ids = jnp.concatenate(
            [flat_ids, jnp.zeros((n_padded - n,), jnp.int32)])
    # TODO(synk): for extremely long token streams (hundreds of K tokens) the
    # scalar-prefetched id array should be chunked to respect SMEM capacity.

    kernel = functools.partial(_embed_hbm_gather_kernel,
                               tokens_per_block=tb, sub_block=sb, scale=scale)
    return pl.pallas_call(
        kernel,
        out_shape=jax.ShapeDtypeStruct((n_padded, d), table.dtype),
        grid_spec=pltpu.PrefetchScalarGridSpec(
            num_scalar_prefetch=1,                          # ids -> SMEM
            grid=(n_blocks,),
            in_specs=[pl.BlockSpec(memory_space=pl.ANY)],   # table in HBM
            out_specs=pl.BlockSpec((tb, d), lambda i, ids: (i, 0)),
            scratch_shapes=[
                pltpu.VMEM((2, sb, d), table.dtype),        # gather dbl-buf
                pltpu.SemaphoreType.DMA((2,)),              # one sem / slot
            ],
        ),
        compiler_params=pltpu.CompilerParams(
            dimension_semantics=("parallel",)),
        cost_estimate=pl.CostEstimate(
            flops=n_padded * d,
            transcendentals=0,
            bytes_accessed=2 * n_padded * d * itemsize + 4 * n_padded),
    )(flat_ids, table)


# --------------------------------------------------------------------------
# Public wrapper: InputEmbeddings.forward
# --------------------------------------------------------------------------
def input_embeddings_forward(token_ids, embedding_table, *,
                             tokens_per_block=None):
    """embedding lookup scaled by sqrt(d_model).

    token_ids:       integer array of any shape (e.g. (batch, seq)).
    embedding_table: (vocab_size, d_model) float array.
    Returns token_ids.shape + (d_model,), dtype of the table.
    """
    vocab_size, d_model = embedding_table.shape
    scale = math.sqrt(d_model)
    itemsize = jnp.dtype(embedding_table.dtype).itemsize
    pack = _sublane_pack(embedding_table.dtype)

    flat_ids = token_ids.reshape(-1).astype(jnp.int32)
    n_tokens = flat_ids.shape[0]

    table_bytes = vocab_size * d_model * itemsize
    if (table_bytes <= _SMALL_TABLE_MAX_BYTES
            and vocab_size <= _SMALL_TABLE_MAX_VOCAB):
        out_flat = _forward_small_table(flat_ids, embedding_table, scale, pack)
    else:
        out_flat = _forward_hbm_gather(flat_ids, embedding_table, scale, pack,
                                       tokens_per_block)
    return out_flat[:n_tokens].reshape(*token_ids.shape, d_model)


if __name__ == "__main__":
    key = jax.random.PRNGKey(0)
    k_ids, k_tab, k_ids2, k_tab2 = jax.random.split(key, 4)
    B, S = 2, 8

    # Case 1: small table -> VMEM-resident one-hot-matmul gather path.
    d_model, vocab_size = 128, 64
    token_ids = jax.random.randint(k_ids, (B, S), 0, vocab_size,
                                   dtype=jnp.int32)
    table = jax.random.normal(k_tab, (vocab_size, d_model), dtype=jnp.float32)
    out = jax.block_until_ready(input_embeddings_forward(token_ids, table))
    ref = jnp.take(table, token_ids, axis=0) * math.sqrt(d_model)
    assert out.shape == (B, S, d_model)
    assert jnp.allclose(out, ref, atol=1e-4, rtol=1e-4), "small-table mismatch"

    # Case 2: larger table -> HBM manual-DMA gather path (double-buffered).
    d_model2, vocab_size2 = 256, 4096
    token_ids2 = jax.random.randint(k_ids2, (B, S), 0, vocab_size2,
                                    dtype=jnp.int32)
    table2 = jax.random.normal(k_tab2, (vocab_size2, d_model2),
                               dtype=jnp.float32)
    out2 = jax.block_until_ready(input_embeddings_forward(token_ids2, table2))
    ref2 = jnp.take(table2, token_ids2, axis=0) * math.sqrt(d_model2)
    assert out2.shape == (B, S, d_model2)
    assert jnp.allclose(out2, ref2, atol=1e-4, rtol=1e-4), "hbm-gather mismatch"

    print("KERNEL_OK")
</pallas_src>

<mosaic_0001>
module attributes {stable_mosaic.version = 11 : i64} {
  func.func @_embed_small_table_kernel(%arg0: i32, %arg1: memref<1x16x1xi32, #tpu.memory_space<vmem>>, %arg2: memref<64x128xf32, #tpu.memory_space<vmem>>, %arg3: memref<16x128xf32, #tpu.memory_space<vmem>>) attributes {dimension_semantics = [#tpu.dimension_semantics<parallel>], iteration_bounds = array<i64: 1>, scalar_prefetch = 0 : i64, scratch_operands = 0 : i64, tpu.core_type = #tpu.core_type<tc>, window_params = [{transform_indices = @transform_0, window_bounds = array<i64: 1, 16, 1>}, {pipeline_mode = #tpu.pipeline_mode<synchronous>, transform_indices = @transform_1, window_bounds = array<i64: 64, 128>}, {transform_indices = @transform_2, window_bounds = array<i64: 16, 128>}]} {
    %c0 = arith.constant 0 : index
    %c0_0 = arith.constant 0 : index
    %c0_1 = arith.constant 0 : index
    %0 = vector.load %arg1[%c0, %c0_0, %c0_1] : memref<1x16x1xi32, #tpu.memory_space<vmem>>, vector<1x16x1xi32>
    %1 = vector.shape_cast %0 : vector<1x16x1xi32> to vector<16x1xi32>
    %2 = tpu.iota {dimensions = array<i32: 1>} : vector<16x64xi32>
    %3 = vector.broadcast %1 : vector<16x1xi32> to vector<16x64xi32>
    %4 = arith.cmpi eq, %3, %2 : vector<16x64xi32>
    %5 = arith.extui %4 : vector<16x64xi1> to vector<16x64xi32>
    %6 = arith.sitofp %5 : vector<16x64xi32> to vector<16x64xf32>
    %c0_2 = arith.constant 0 : index
    %c0_3 = arith.constant 0 : index
    %7 = vector.load %arg2[%c0_2, %c0_3] : memref<64x128xf32, #tpu.memory_space<vmem>>, vector<64x128xf32>
    %cst = arith.constant dense<0.000000e+00> : vector<16x128xf32>
    %8 = tpu.matmul %6, %7, %cst {dimension_numbers = #tpu.dot_dimension_numbers<[1], [0], [0], [1], [0, 0, 1, 1], [], []>} : vector<16x64xf32>, vector<64x128xf32>, vector<16x128xf32> -> vector<16x128xf32>
    %cst_4 = arith.constant 11.3137083 : f32
    %9 = vector.broadcast %cst_4 : f32 to vector<16x128xf32>
    %10 = arith.mulf %8, %9 : vector<16x128xf32>
    %c0_5 = arith.constant 0 : index
    %c0_6 = arith.constant 0 : index
    %11 = vector.load %arg3[%c0_5, %c0_6] : memref<16x128xf32, #tpu.memory_space<vmem>>, vector<16x128xf32>
    tpu.vector_store %arg3[%c0_5, %c0_6], %10 {strides = array<i32>} : memref<16x128xf32, #tpu.memory_space<vmem>>, vector<16x128xf32>,
    return
  }
  func.func @transform_0(%arg0: i32) -> (i32, i32, i32) {
    %c0_i32 = arith.constant 0 : i32
    %c0_i32_0 = arith.constant 0 : i32
    %c0_i32_1 = arith.constant 0 : i32
    return %arg0, %c0_i32, %c0_i32_0 : i32, i32, i32
  }
  func.func @transform_1(%arg0: i32) -> (i32, i32) {
    %c0_i32 = arith.constant 0 : i32
    %c0_i32_0 = arith.constant 0 : i32
    %c0_i32_1 = arith.constant 0 : i32
    return %c0_i32, %c0_i32_0 : i32, i32
  }
  func.func @transform_2(%arg0: i32) -> (i32, i32) {
    %c0_i32 = arith.constant 0 : i32
    %c0_i32_0 = arith.constant 0 : i32
    return %arg0, %c0_i32 : i32, i32
  }
}

</mosaic_0001>

<bundles_post_ra>
// kernel: tpu_custom_call.1
= control target key start
LH: loop header
LB: loop body
LE: loop exit
PB: predicated region body
PF: predicated region fallthrough
CT: control target
= control target key end

     0   :  { %7 = vsyncpa [#allocation3], 0  ;;  %s314_s0 = inlined_call_operand.vmem [shape: s32[1,16,1], index: 0, kind: input, shape index: {}]   ;;  %s315_s1 = inlined_call_operand.hbm [shape: f32[64,128], index: 1, kind: input, shape index: {}]   ;;  %s316_s2 = inlined_call_operand.hbm [shape: f32[16,128], index: 2, kind: output, shape index: {}]  }
   0x1   :  { %8 = vsyncpa [#allocation4], 0  ;;  %s257_s9 = smov [#allocation2]   ;;  %s209_s13 = scalar_lea.hbm %s315_s1, 1024 }
   0x2   :  { %s16_s10 = sshll.u32 %s257_s9, 4  ;;  %p210_p0 = scmp.ne.s32.totalorder %s315_s1, %s209_s13  ;;  %s17_s10 = int_to_ptr.vmem [resolvable:$true] %s16_s10 }
   0x3   :  { %p213_p1 = scmp.lt.u32.totalorder %s209_s13, %s315_s1 }
   0x5   :  { %p215_p2 = pnand %p213_p1, %p210_p0 }
   0x7   :  { %218 = shalt.err (!%p215_p2)
}
   0x8   :  { %s219_s18 = scalar_lea.vmem %s17_s10, 1024  ;;  %p224_p4 = scmp.lt.s32.totalorder %s17_s10, %s17_s10 }
   0x9   :  { %p220_p3 = scmp.ne.s32.totalorder %s17_s10, %s219_s18  ;;  %p225_p5 = scmp.lt.s32.totalorder %s219_s18, %s219_s18 }
   0xb   :  { %p226_p6 = por %p225_p5, %p224_p4 }
   0xd   :  { %p227_p7 = pnand %p226_p6, %p220_p3 }
   0xf   :  { %230 = shalt.err (!%p227_p7)
}
  0x10   :  { %s258_s19 = smov 128   ;;  %s259_s20 = smov 8  }
  0x11   :  { %22 = dma.hbm_to_vmem [thread:$0]  %s315_s1, 1024, %s17_s10, [#allocation3], %s258_s19, %s258_s19, %s259_s20  }
  0x12   :  { %253 = dma.done.wait [#allocation3], 1024  }
  0x13   :  { %254 = vsyncadd [#allocation3], 4294966272  ;;  %v260_v0 = vmov 0   ;;  %v26_v1 = vld [vmem:[%s314_s0] sm:$0xff]  ;;  %v43_v3 = vld [vmem:[#allocation2 + $0x8] sm:$0xff]  ;;  %v28_v15 = vlaneseq  ;;  %vm50_vm0 = vcmask 523264  }
  0x14   :  { %208 = vset.pattern.permute.xlu0 %v260_v0  ;;  %v42_v2 = vld [vmem:[#allocation2] sm:$0xff]  ;;  %v44_v4 = vld [vmem:[#allocation2 + $0x10] sm:$0xff]  ;;  %v45_v5 = vld [vmem:[#allocation2 + $0x18] sm:$0xff]  ;;  %v261_v18 = vmov 0.0  }
  0x15   :  { %31 = vperm.xlu0 %208, %v26_v1   ;;  %v27_v6 = vld [vmem:[%s314_s0 + $0x8] sm:$0xff]  ;;  %v186_v7 = vpack.c.bf16 %v43_v3, %v42_v2  ;;  %v190_v8 = vpack.c.bf16 %v45_v5, %v44_v4  ;;  %v46_v9 = vld [vmem:[#allocation2 + $0x20] sm:$0xff]  ;;  %v48_v12 = vld [vmem:[#allocation2 + $0x30] sm:$0xff]  ;;  %v29_v16 = vand.u32 127, %v28_v15  ;;  %s262_s0 = smov [#allocation5]  }
  0x16   :  { %v47_v10 = vld [vmem:[#allocation2 + $0x28] sm:$0xff]  ;;  %v49_v13 = vld [vmem:[#allocation2 + $0x38] sm:$0xff]  ;;  %s141_s1 = sshll.u32 %s262_s0, 4  ;;  %s142_s1 = int_to_ptr.vmem [resolvable:$true] %s141_s1 }
  0x17   :  { %187 = vmatprep.subr.bf16.mxu0 %v186_v7  ;;  %v194_v11 = vpack.c.bf16 %v47_v10, %v46_v9  ;;  %v198_v14 = vpack.c.bf16 %v49_v13, %v48_v12  ;;  %s231_s27 = scalar_lea.vmem %s142_s1, 256  ;;  %p236_p9 = scmp.lt.s32.totalorder %s142_s1, %s142_s1 }
  0x18   :  { %189 = vmatpush3.bf16.msra.mxu0 %v186_v7  ;;  %p232_p8 = scmp.ne.s32.totalorder %s142_s1, %s231_s27  ;;  %p237_p10 = scmp.lt.s32.totalorder %s231_s27, %s231_s27 }
  0x19   :  { %34 = vperm.xlu0 %208, %v27_v6   ;;  %191 = vmatprep.subr.bf16.mxu0 %v190_v8 }
  0x1a   :  { %p238_p11 = por %p237_p10, %p236_p9 }
  0x1c   :  { %193 = vmatpush3.bf16.msra.mxu0 %v190_v8  ;;  %p239_p12 = pnand %p238_p11, %p232_p8 }
  0x1d   :  { %195 = vmatprep.subr.bf16.mxu0 %v194_v11 }
  0x20   :  { %197 = vmatpush3.bf16.msra.mxu0 %v194_v11 }
  0x21   :  { %199 = vmatprep.subr.bf16.mxu0 %v198_v14 }
  0x24   :  { %201 = vmatpush3.bf16.msra.mxu0 %v198_v14 }
  0x94   :  { %v32_v17 = vpop.permute.xlu0 %31 }
  0x95   :  { %vm36_vm1 = vcmp.eq.s32.totalorder %v32_v17, %v29_v16 }
  0x96   :  { %v153_v19 = vsel %vm36_vm1, 1.0, %v261_v18 }
  0x97   :  { %183 = vmatprep.mubr.msk.f32.mxu0 %vm50_vm0, %v153_v19 }
  0x98   :  { %v35_v20 = vpop.permute.xlu0 %34 }
  0x99   :  { %vm37_vm2 = vcmp.eq.s32.totalorder %v35_v20, %v29_v16 }
  0x9a   :  { %v154_v21 = vsel %vm37_vm2, 1.0, %v261_v18 }
  0x9b   :  { %184 = vmatmul.mubr.msk.f32.vlgmr.msra.gmra.mrb[0].mxu0 %vm50_vm0, %v154_v21 }
 0x16e   :  { %v185_v22 = vpop.f32.mrb[0].mxu0 }
 0x16f   :  { %v133_v23 = vmul.f32 11.313708, %v185_v22  ;;  %v123_v24 = vpop.f32.mrb[1].mxu0 }
 0x170   :  { %v132_v25 = vmul.f32 11.313708, %v123_v24 }
 0x171   :  { %135 = vst [vmem:[#allocation5 + $0x8] sm:$0xff] %v133_v23 }
 0x172   :  { %134 = vst [vmem:[#allocation5] sm:$0xff] %v132_v25 }
 0x173   :  { %242 = shalt.err (!%p239_p12)
}
 0x174   :  { %s243_s30 = scalar_lea.hbm %s316_s2, 256 }
 0x175   :  { %p244_p13 = scmp.ne.s32.totalorder %s316_s2, %s243_s30  ;;  %p247_p0 = scmp.lt.u32.totalorder %s243_s30, %s316_s2 }
 0x177   :  { %p249_p1 = pnand %p247_p0, %p244_p13 }
 0x179   :  { %252 = shalt.err (!%p249_p1)
}
 0x17a   :  { %147 = dma.vmem_to_hbm [thread:$0]  %s142_s1, 256, %s316_s2, [#allocation4], %s258_s19, %s258_s19, %s259_s20  }
 0x17b   :  { %255 = dma.done.wait [#allocation4], 256  }
 0x17c   :  { %256 = vsyncadd [#allocation4], 4294967040 }
 0x17d   :  { %151 = vsyncpa [#allocation3], 1 }
 0x17e   :  { %152 = vsyncpa [#allocation4], 1 }

</bundles_post_ra>
